<compile_context>
chip_gen: v6e
topology: v6e:2x2x1
jax: 0.10.0
libtpu: 0.0.40
codegen_flags: <defaults>
</compile_context>

<pallas_src>
import functools

import jax
import jax.numpy as jnp
from jax.experimental import pallas as pl
from jax.experimental.pallas import tpu as pltpu


# ---------------------------------------------------------------------------
# Generation-aware VMEM budget.
# ---------------------------------------------------------------------------
def _vmem_limit_bytes():
    """~3/4 of per-core VMEM, capped at 96 MiB (v7x: 48 MiB, v5e/v6e: 96 MiB)."""
    cap = 64 * 1024 * 1024  # conservative default = v7x per-TC VMEM
    try:
        info = pltpu.get_tpu_info()
        cap = int(getattr(info, "vmem_capacity_bytes", cap)) or cap
    except Exception:
        pass
    return min((cap * 3) // 4, 96 * 1024 * 1024)


def _round_up(x, m):
    return ((x + m - 1) // m) * m


def _round_down(x, m):
    return (x // m) * m


def _sublane_min(dtype):
    """Native sublane granularity for the dtype (packing along sublanes)."""
    bits = jnp.dtype(dtype).itemsize * 8
    if bits >= 32:
        return 8
    if bits == 16:
        return 16
    return 32


# ---------------------------------------------------------------------------
# Tile selection (masked path): grid = (B tiles, F tiles, N tiles[reduction]).
# ---------------------------------------------------------------------------
def _masked_tiles(B, N, F, dtype, limit):
    itemsize = jnp.dtype(dtype).itemsize
    smin = _sublane_min(dtype)
    budget = limit // 2          # double-buffered input tiles (seq + mask)
    mask_row = 128 * 4           # (tb, tn, 1) f32 mask tile is lane-padded to 128

    # Feature (lane) tile: whole F when even a minimal (1, smin, F) slab fits
    # -> fully contiguous HBM reads, one grid step over F, mask fetched once.
    if 2 * smin * (F * itemsize + mask_row) <= budget:
        tf, F_pad = F, F
    else:
        tf_max = (budget // (2 * smin) - mask_row) // itemsize
        tf = max(128, _round_down(tf_max, 128))
        F_pad = _round_up(F, tf)

    row_bytes = tf * itemsize + mask_row

    # Batch (grid) tile: keep >=2 grid blocks along the parallel B axis when
    # B >= 2 (v7x dual TensorCore), never outgrow the budget at the minimum tn.
    tb_cap = max(1, budget // (2 * smin * row_bytes))
    tb = 1 if B <= 1 else min((B + 1) // 2, tb_cap)
    B_pad = _round_up(B, tb)

    # Node (sublane / reduction) tile: fill the remaining budget.
    tn_cap = max(smin, _round_down(budget // (2 * tb * row_bytes), smin))
    tn = min(tn_cap, _round_up(N, smin))
    N_pad = _round_up(N, tn)
    return tf, tn, tb, F_pad, N_pad, B_pad


# ---------------------------------------------------------------------------
# Tile selection (unmasked path): grid = (N tiles, F tiles, B tiles[reduction]).
# ---------------------------------------------------------------------------
def _mean_tiles(B, N, F, dtype, limit):
    itemsize = jnp.dtype(dtype).itemsize
    smin = _sublane_min(dtype)
    budget = limit // 2          # double-buffered seq tiles

    if 2 * smin * F * itemsize <= budget:
        tf, F_pad = F, F
    else:
        tf = max(128, _round_down(budget // (2 * smin * itemsize), 128))
        F_pad = _round_up(F, tf)

    row_bytes = tf * itemsize

    # Batch (reduction) tile: leading block dim, layout-unconstrained -> cover
    # as much of B as fits at the minimum node tile.
    tb_cap = max(1, budget // (2 * smin * row_bytes))
    tb = min(B, tb_cap)
    B_pad = _round_up(B, tb)

    # Node (parallel output) tile: fill the remaining budget; keep >=2 grid
    # blocks along N when possible so v7x's two TensorCores both get work.
    N_base = _round_up(N, smin)
    tn_cap = max(smin, _round_down(budget // (2 * tb * row_bytes), smin))
    if N_base >= 2 * smin:
        tn_cap = min(tn_cap, max(smin, _round_down(N_base // 2, smin)))
    tn = min(tn_cap, N_base)
    N_pad = _round_up(N, tn)
    return tf, tn, tb, F_pad, N_pad, B_pad


# ---------------------------------------------------------------------------
# Kernel 1: masked readout   out[b, f] = sum_n seq[b, n, f] * msk[b, n] / sum(msk)
# Grid: (B tiles [parallel], F tiles [parallel], N tiles [arbitrary, last]).
# ---------------------------------------------------------------------------
def _masked_readout_kernel(inv_ref, seq_ref, msk_ref, out_ref, acc_ref):
    n = pl.program_id(2)

    @pl.when(n == 0)
    def _():
        acc_ref[...] = jnp.zeros_like(acc_ref)

    seq = seq_ref[...].astype(jnp.float32)       # (tb, tn, tf) cast per tile
    msk = msk_ref[...].astype(jnp.float32)       # (tb, tn, 1)  lane-broadcast
    # Fused multiply + reduce over the node (sublane) axis; no (B,N,F) f32 temp.
    acc_ref[...] += jnp.sum(seq * msk, axis=1, keepdims=True)   # (tb, 1, tf)

    @pl.when(n == pl.num_programs(2) - 1)
    def _():
        # Hoisted global 1/sum(msk) scalar from SMEM; multiply, don't divide.
        out_ref[...] = (acc_ref[...] * inv_ref[0]).astype(out_ref.dtype)


def avg_readout_masked(seq, msk):
    B, N, F = seq.shape
    assert msk.shape == (B, N)
    limit = _vmem_limit_bytes()
    tf, tn, tb, F_pad, N_pad, B_pad = _masked_tiles(B, N, F, seq.dtype, limit)

    # Global mask sum (== torch.sum(msk)) hoisted out of the tile loop.
    # NOTE: matches PyTorch exactly, incl. inf/nan if the mask is all zeros.
    inv_denom = (1.0 / jnp.sum(msk.astype(jnp.float32))).reshape(1)

    msk_f = msk.astype(jnp.float32)
    # One-time zero pad only when a dim is not divisible by its tile: padded
    # nodes carry msk == 0 (contribute nothing); padded batch / feature slots
    # are sliced off the output.
    if (B_pad, N_pad, F_pad) != (B, N, F):
        seq = jnp.pad(seq, ((0, B_pad - B), (0, N_pad - N), (0, F_pad - F)))
    if (B_pad, N_pad) != (B, N):
        msk_f = jnp.pad(msk_f, ((0, B_pad - B), (0, N_pad - N)))
    # Mask presented as (B, N, 1): N on sublanes (matching seq), broadcast over lanes.
    msk3 = msk_f.reshape(B_pad, N_pad, 1)

    grid = (B_pad // tb, F_pad // tf, N_pad // tn)
    out = pl.pallas_call(
        _masked_readout_kernel,
        # Output kept 3-D (B, 1, F) so the batch tile tb may be < 8 without
        # violating the (8, 128) block constraint; squeezed below.
        out_shape=jax.ShapeDtypeStruct((B_pad, 1, F_pad), seq.dtype),
        grid=grid,
        in_specs=[
            pl.BlockSpec(memory_space=pltpu.MemorySpace.SMEM),        # 1/sum(msk)
            pl.BlockSpec((tb, tn, tf), lambda b, f, n: (b, n, f)),    # seq tile
            pl.BlockSpec((tb, tn, 1), lambda b, f, n: (b, n, 0)),     # msk tile
        ],
        out_specs=pl.BlockSpec((tb, 1, tf), lambda b, f, n: (b, 0, f)),
        scratch_shapes=[pltpu.VMEM((tb, 1, tf), jnp.float32)],
        compiler_params=pltpu.CompilerParams(
            dimension_semantics=("parallel", "parallel", "arbitrary"),
            vmem_limit_bytes=limit,
        ),
    )(inv_denom, seq, msk3)
    return out.reshape(B_pad, F_pad)[:B, :F]


# ---------------------------------------------------------------------------
# Kernel 2: unmasked readout   out[n, f] = mean_b seq[b, n, f]   (torch.mean(seq, 0))
# Grid: (N tiles [parallel], F tiles [parallel], B tiles [arbitrary, last]).
# ---------------------------------------------------------------------------
def _mean_readout_kernel(seq_ref, out_ref, acc_ref, *, inv_b):
    b = pl.program_id(2)

    @pl.when(b == 0)
    def _():
        acc_ref[...] = jnp.zeros_like(acc_ref)

    acc_ref[...] += jnp.sum(seq_ref[...].astype(jnp.float32), axis=0)  # (tn, tf)

    @pl.when(b == pl.num_programs(2) - 1)
    def _():
        out_ref[...] = (acc_ref[...] * inv_b).astype(out_ref.dtype)


def avg_readout_unmasked(seq):
    B, N, F = seq.shape
    limit = _vmem_limit_bytes()
    tf, tn, tb, F_pad, N_pad, B_pad = _mean_tiles(B, N, F, seq.dtype, limit)

    # Zero-padded batches contribute 0 to the sum and we divide by the
    # ORIGINAL B, so the mean is exact; padded N/F slots are sliced off.
    if (B_pad, N_pad, F_pad) != (B, N, F):
        seq = jnp.pad(seq, ((0, B_pad - B), (0, N_pad - N), (0, F_pad - F)))

    grid = (N_pad // tn, F_pad // tf, B_pad // tb)
    out = pl.pallas_call(
        functools.partial(_mean_readout_kernel, inv_b=1.0 / B),
        out_shape=jax.ShapeDtypeStruct((N_pad, F_pad), seq.dtype),
        grid=grid,
        in_specs=[pl.BlockSpec((tb, tn, tf), lambda n, f, b: (b, n, f))],
        out_specs=pl.BlockSpec((tn, tf), lambda n, f, b: (n, f)),
        scratch_shapes=[pltpu.VMEM((tn, tf), jnp.float32)],
        compiler_params=pltpu.CompilerParams(
            dimension_semantics=("parallel", "parallel", "arbitrary"),
            vmem_limit_bytes=limit,
        ),
    )(seq)
    return out[:N, :F]


def avg_readout(seq, msk=None):
    """JAX/Pallas equivalent of AvgReadout.forward(seq, msk)."""
    if msk is None:
        return avg_readout_unmasked(seq)
    return avg_readout_masked(seq, msk)


if __name__ == "__main__":
    key = jax.random.PRNGKey(0)
    k_seq, k_msk, k_seq2, k_msk2, k_seq3, k_msk3 = jax.random.split(key, 6)

    # --- Small shapes consistent with the module (single-tile grid) ---------
    B, N, F = 2, 8, 32
    seq = jax.random.normal(k_seq, (B, N, F), dtype=jnp.float32)
    msk = (jax.random.uniform(k_msk, (B, N)) > 0.3).astype(jnp.float32)
    msk = msk.at[:, 0].set(1.0)  # at least one active node per graph

    out_masked = jax.block_until_ready(avg_readout(seq, msk))
    ref_masked = jnp.sum(seq * msk[:, :, None], axis=1) / jnp.sum(msk)
    assert out_masked.shape == (B, F)
    assert jnp.allclose(out_masked, ref_masked, atol=1e-5, rtol=1e-5)

    out_mean = jax.block_until_ready(avg_readout(seq, None))
    ref_mean = jnp.mean(seq, axis=0)
    assert out_mean.shape == (N, F)
    assert jnp.allclose(out_mean, ref_mean, atol=1e-5, rtol=1e-5)

    # --- Larger shape exercising the tiled / pipelined reduction path -------
    B2, N2, F2 = 2, 1024, 256
    seq2 = jax.random.normal(k_seq2, (B2, N2, F2), dtype=jnp.float32)
    msk2 = (jax.random.uniform(k_msk2, (B2, N2)) > 0.5).astype(jnp.float32)
    msk2 = msk2.at[:, 0].set(1.0)

    out2 = jax.block_until_ready(avg_readout(seq2, msk2))
    ref2 = jnp.sum(seq2 * msk2[:, :, None], axis=1) / jnp.sum(msk2)
    assert jnp.allclose(out2, ref2, atol=1e-5, rtol=1e-5)

    out3 = jax.block_until_ready(avg_readout(seq2, None))
    ref3 = jnp.mean(seq2, axis=0)
    assert jnp.allclose(out3, ref3, atol=1e-5, rtol=1e-5)

    # --- Non-divisible dims exercising the pad-and-slice path ---------------
    B3, N3, F3 = 3, 37, 48
    seq3 = jax.random.normal(k_seq3, (B3, N3, F3), dtype=jnp.float32)
    msk3 = (jax.random.uniform(k_msk3, (B3, N3)) > 0.4).astype(jnp.float32)
    msk3 = msk3.at[:, 0].set(1.0)

    out4 = jax.block_until_ready(avg_readout(seq3, msk3))
    ref4 = jnp.sum(seq3 * msk3[:, :, None], axis=1) / jnp.sum(msk3)
    assert out4.shape == (B3, F3)
    assert jnp.allclose(out4, ref4, atol=1e-5, rtol=1e-5)

    out5 = jax.block_until_ready(avg_readout(seq3, None))
    ref5 = jnp.mean(seq3, axis=0)
    assert out5.shape == (N3, F3)
    assert jnp.allclose(out5, ref5, atol=1e-5, rtol=1e-5)

    # --- bf16 inputs (dtype-aware sublane tiles, f32 accumulation) ----------
    seq_bf = seq.astype(jnp.bfloat16)
    out_bf = jax.block_until_ready(avg_readout(seq_bf, msk))
    ref_bf = (jnp.sum(seq_bf.astype(jnp.float32) * msk[:, :, None], axis=1)
              / jnp.sum(msk)).astype(jnp.bfloat16)
    assert out_bf.dtype == jnp.bfloat16
    assert jnp.allclose(out_bf.astype(jnp.float32), ref_bf.astype(jnp.float32),
                        atol=1e-2, rtol=1e-2)

    print("KERNEL_OK")
</pallas_src>

<mosaic_0001>
module attributes {stable_mosaic.version = 11 : i64} {
  func.func @_masked_readout_kernel(%arg0: i32, %arg1: i32, %arg2: i32, %arg3: memref<1xf32, #tpu.memory_space<smem>>, %arg4: memref<1x8x32xf32, #tpu.memory_space<vmem>>, %arg5: memref<1x8x1xf32, #tpu.memory_space<vmem>>, %arg6: memref<1x1x32xf32, #tpu.memory_space<vmem>>, %arg7: memref<1x1x32xf32, #tpu.memory_space<vmem>>) attributes {dimension_semantics = [#tpu.dimension_semantics<parallel>, #tpu.dimension_semantics<parallel>, #tpu.dimension_semantics<arbitrary>], iteration_bounds = array<i64: 2, 1, 1>, scalar_prefetch = 0 : i64, scratch_operands = 1 : i64, tpu.core_type = #tpu.core_type<tc>, window_params = [{transform_indices = @transform_0, window_bounds = array<i64: 1>}, {transform_indices = @transform_1, window_bounds = array<i64: 1, 8, 32>}, {transform_indices = @transform_2, window_bounds = array<i64: 1, 8, 1>}, {transform_indices = @transform_3, window_bounds = array<i64: 1, 1, 32>}]} {
    %c0_i32 = arith.constant 0 : i32
    %0 = arith.cmpi eq, %arg2, %c0_i32 : i32
    %1 = arith.extui %0 : i1 to i32
    %c0_i32_0 = arith.constant 0 : i32
    %2 = arith.cmpi ne, %1, %c0_i32_0 : i32
    scf.if %2 {
      %cst_14 = arith.constant 0.000000e+00 : f32
      %15 = vector.broadcast %cst_14 : f32 to vector<1x1x32xf32>
      %c0_15 = arith.constant 0 : index
      %c0_16 = arith.constant 0 : index
      %c0_17 = arith.constant 0 : index
      %16 = vector.load %arg7[%c0_15, %c0_16, %c0_17] : memref<1x1x32xf32, #tpu.memory_space<vmem>>, vector<1x1x32xf32>
      tpu.vector_store %arg7[%c0_15, %c0_16, %c0_17], %15 {strides = array<i32>} : memref<1x1x32xf32, #tpu.memory_space<vmem>>, vector<1x1x32xf32>,
    } else {
    }
    %c0 = arith.constant 0 : index
    %c0_1 = arith.constant 0 : index
    %c0_2 = arith.constant 0 : index
    %3 = vector.load %arg4[%c0, %c0_1, %c0_2] : memref<1x8x32xf32, #tpu.memory_space<vmem>>, vector<1x8x32xf32>
    %c0_3 = arith.constant 0 : index
    %c0_4 = arith.constant 0 : index
    %c0_5 = arith.constant 0 : index
    %4 = vector.load %arg5[%c0_3, %c0_4, %c0_5] : memref<1x8x1xf32, #tpu.memory_space<vmem>>, vector<1x8x1xf32>
    %c0_6 = arith.constant 0 : index
    %c0_7 = arith.constant 0 : index
    %c0_8 = arith.constant 0 : index
    %5 = vector.load %arg7[%c0_6, %c0_7, %c0_8] : memref<1x1x32xf32, #tpu.memory_space<vmem>>, vector<1x1x32xf32>
    %6 = vector.broadcast %4 : vector<1x8x1xf32> to vector<1x8x32xf32>
    %7 = arith.mulf %3, %6 : vector<1x8x32xf32>
    %cst = arith.constant dense<0.000000e+00> : vector<1x32xf32>
    %8 = vector.multi_reduction <add>, %7, %cst [1] : vector<1x8x32xf32> to vector<1x32xf32>
    %9 = vector.shape_cast %8 : vector<1x32xf32> to vector<1x1x32xf32>
    %10 = arith.addf %5, %9 : vector<1x1x32xf32>
    %c0_9 = arith.constant 0 : index
    %c0_10 = arith.constant 0 : index
    %c0_11 = arith.constant 0 : index
    %11 = vector.load %arg7[%c0_9, %c0_10, %c0_11] : memref<1x1x32xf32, #tpu.memory_space<vmem>>, vector<1x1x32xf32>
    tpu.vector_store %arg7[%c0_9, %c0_10, %c0_11], %10 {strides = array<i32>} : memref<1x1x32xf32, #tpu.memory_space<vmem>>, vector<1x1x32xf32>,
    %c0_i32_12 = arith.constant 0 : i32
    %12 = arith.cmpi eq, %arg2, %c0_i32_12 : i32
    %13 = arith.extui %12 : i1 to i32
    %c0_i32_13 = arith.constant 0 : i32
    %14 = arith.cmpi ne, %13, %c0_i32_13 : i32
    scf.if %14 {
      %c0_14 = arith.constant 0 : index
      %c0_15 = arith.constant 0 : index
      %c0_16 = arith.constant 0 : index
      %15 = vector.load %arg7[%c0_14, %c0_15, %c0_16] : memref<1x1x32xf32, #tpu.memory_space<vmem>>, vector<1x1x32xf32>
      %c0_17 = arith.constant 0 : index
      %16 = memref.load %arg3[%c0_17] : memref<1xf32, #tpu.memory_space<smem>>
      %17 = vector.broadcast %16 : f32 to vector<1x1x32xf32>
      %18 = arith.mulf %15, %17 : vector<1x1x32xf32>
      %c0_18 = arith.constant 0 : index
      %c0_19 = arith.constant 0 : index
      %c0_20 = arith.constant 0 : index
      %19 = vector.load %arg6[%c0_18, %c0_19, %c0_20] : memref<1x1x32xf32, #tpu.memory_space<vmem>>, vector<1x1x32xf32>
      tpu.vector_store %arg6[%c0_18, %c0_19, %c0_20], %18 {strides = array<i32>} : memref<1x1x32xf32, #tpu.memory_space<vmem>>, vector<1x1x32xf32>,
    } else {
    }
    return
  }
  func.func @transform_0(%arg0: i32, %arg1: i32, %arg2: i32) -> i32 {
    %c0_i32 = arith.constant 0 : i32
    %c0_i32_0 = arith.constant 0 : i32
    return %c0_i32 : i32
  }
  func.func @transform_1(%arg0: i32, %arg1: i32, %arg2: i32) -> (i32, i32, i32) {
    %c0_i32 = arith.constant 0 : i32
    return %arg0, %arg2, %arg1 : i32, i32, i32
  }
  func.func @transform_2(%arg0: i32, %arg1: i32, %arg2: i32) -> (i32, i32, i32) {
    %c0_i32 = arith.constant 0 : i32
    %c0_i32_0 = arith.constant 0 : i32
    return %arg0, %arg2, %c0_i32 : i32, i32, i32
  }
  func.func @transform_3(%arg0: i32, %arg1: i32, %arg2: i32) -> (i32, i32, i32) {
    %c0_i32 = arith.constant 0 : i32
    %c0_i32_0 = arith.constant 0 : i32
    return %arg0, %c0_i32, %arg1 : i32, i32, i32
  }
}

</mosaic_0001>

<bundles_post_ra>
// kernel: tpu_custom_call.1
= control target key start
LH: loop header
LB: loop body
LE: loop exit
PB: predicated region body
PF: predicated region fallthrough
CT: control target
= control target key end

     0   :  { %s650_s0 = inlined_call_operand.<no memory space> [shape: f32[1], index: 0, kind: input, shape index: {}]   ;;  %s651_s1 = inlined_call_operand.vmem [shape: f32[2,8,32], index: 1, kind: input, shape index: {}]   ;;  %s652_s2 = inlined_call_operand.vmem [shape: f32[2,8,1], index: 2, kind: input, shape index: {}]   ;;  %s653_s3 = inlined_call_operand.hbm [shape: f32[2,1,32], index: 3, kind: output, shape index: {}]  }
   0x1   :  { %8 = sst [smem:[#allocation3]] %s650_s0 }
   0x2   :  { %9 = vsyncpa [#allocation5], 0 }
   0x3   :  { %11 = vsyncpa [#allocation5 + $0x1], 0  ;;  %s545_s14 = smov 0   ;;  %s547_s15 = smov 0  }
   0x4   :  { %s549_s16 = smov 0   ;;  %s551_s17 = smov 0  }
   0x5   :  { %s553_s18 = smov 0   ;;  %s555_s19 = smov 0  }
   0x6 LB: > { %s373_s0 = sadd.s32 4294967295, %s517_s19   ;;  %s374_s20 = sadd.s32 4294967294, %s517_s19   ;;  %s517_s19 = sphi %s555_s19, %s17_s19   ;;  %s513_s18 = sphi %s553_s18, %s660_s18   ;;  %s509_s17 = sphi %s551_s17, %s659_s17   ;;  %s505_s16 = sphi %s549_s16, %s658_s16   ;;  %s501_s15 = sphi %s547_s15, %s657_s15   ;;  %s497_s14 = sphi %s545_s14, %s656_s14  }
   0x7   : > { %s36_s21 = sadd.s32 1, %s513_s18  ;;  %s124_s22 = sadd.s32 1, %s505_s16 }
   0x8   : > { %p38_p0 = scmp.ge.s32.totalorder %s36_s21, 2  ;;  %p134_p1 = scmp.ne.s32.totalorder %s505_s16, %s501_s15 }
   0x9   : > { %p135_p2 = scmp.eq.s32.totalorder %s373_s0, 1  ;;  %p140_p3 = scmp.ne.s32.totalorder %s501_s15, %s497_s14 }
   0xa   : > { %s662_s21 = smov (%p38_p0, %s36_s21), 0  ;;  %p141_p5 = scmp.eq.s32.totalorder %s374_s20, 1 }
   0xb   : > { %p585_p4 = por %p135_p2, %p134_p1  ;;  %s119_s24 = ssub.s32 %s513_s18, %s662_s21 }
   0xc   : > { %p377_p6 = scmp.ge.s32.totalorder %s517_s19, 1  ;;  %p122_p7 = scmp.eq.s32.totalorder %s119_s24, 0 }
   0xd   : > { %p592_p8 = por %p141_p5, %p140_p3  ;;  %p185_p9 = scmp.lt.s32.totalorder %s517_s19, 3 }
   0xe   : > { %s598_s26 = scalar_select %p122_p7, %s505_s16, %s124_s22  }
   0xf   : > { %p186_p10 = pnand %p377_p6, %p185_p9 }
  0x10   : > { %p220_p11 = scmp.lt.s32.totalorder (!%p186_p10), %s509_s17, 1  ;;  %s267_s8 = sld [smem:[#allocation3]] (!%p186_p10) }
  0x11   : > { %189 = sbr.rel (%p186_p10) target bundleno = 191 (0xbf), region = 32  ;;  %s218_s9 = sand.u32 (!%p186_p10), 1, %s501_s15  }
  0x12   : > { %s380_s10 = sshll.u32 (!%p186_p10), %s509_s17, 4  ;;  %s219_s11 = scalar_lea.vmem (!%p186_p10), [#allocation4], %s218_s9 }
  0x13   : > { %s285_s12 = sshll.u32 (!%p186_p10), %s219_s11, 4  ;;  %s283_s20 = scalar_lea.hbm (!%p186_p10), %s653_s3, %s380_s10  ;;  %s286_s12 = int_to_ptr.vmem [resolvable:$true] %s285_s12 }
  0x14   : > { %s272_s22 = scalar_lea.sflag (!%p186_p10), [#allocation5], %s218_s9  ;;  %s441_s24 = scalar_lea.vmem (!%p186_p10), %s286_s12, 16 }
  0x15   : > { %p442_p12 = scmp.ne.s32.totalorder (!%p186_p10), %s286_s12, %s441_s24 }
  0x16   : > { %v519_v0 = vmov 0   ;;  %s221_s27 = scalar_select %p220_p11, %s509_s17, 1  ;;  %vm241_vm0 = vcmask 253952   ;;  %v520_v2 = vmov 0.0   ;;  %vm252_vm1 = vcmask 261120  }
  0x17   : > { %440 = vset.pattern.permute.xlu0 %v519_v0  ;;  %242 = vst.msk [vmem:[#allocation2] sm:$0x1] %vm241_vm0, %v520_v2  ;;  %v268_v15 = vstv %s267_s8  ;;  %p443_p13 = pnand %p442_p12, %p585_p4 }
  0x18   : > { %s378_s28 = sshll.u32 %s221_s27, 3  ;;  %s521_s27 = smov [#allocation4]  }
  0x19   : > { %s236_s4 = scalar_lea.vmem %s652_s2, %s378_s28  ;;  %s229_s7 = scalar_lea.vmem %s651_s1, %s378_s28 }
  0x1a   : > { %v244_v1 = vld [vmem:[%s236_s4] sm:$0xff]  ;;  %p444_p0 = pneg %p443_p13  ;;  %s445_s28 = sshll.u32 %s521_s27, 4  ;;  %s446_s28 = int_to_ptr.vmem [resolvable:$false] %s445_s28 }
  0x1b   : > { %248 = vperm.xlu0 %440, %v244_v1   ;;  %v243_v3 = vld [vmem:[%s229_s7] sm:$0xff]  ;;  %s447_s17 = scalar_lea.vmem %s446_s28, 32  ;;  %p448_p1 = scmp.lt.s32.totalorder %s286_s12, %s446_s28 }
  0x1c   : > { %p449_p2 = scmp.lt.s32.totalorder %s447_s17, %s441_s24 }
  0x1e   : > { %v245_v12 = vld [vmem:[#allocation2] sm:$0x1]  ;;  %p450_p3 = por %p449_p2, %p448_p1 }
  0x20   : > { %p451_p5 = pnand %p450_p3, %p444_p0 }
  0x96   : > { %v249_v4 = vpop.permute.xlu0 %248 }
  0x97   : > { %v251_v5 = vmul.f32 %v249_v4, %v243_v3 }
  0x99   : > { %v253_v6 = vsel %vm252_vm1, %v251_v5, 0.0 }
  0x9a   : > { %v254_v7 = vrot.slane %v253_v6, 4 }
  0x9c   : > { %v255_v8 = vadd.f32 %v254_v7, %v253_v6 }
  0x9e   : > { %v256_v9 = vrot.slane %v255_v8, 2 }
  0xa0   : > { %v257_v10 = vadd.f32 %v256_v9, %v255_v8 }
  0xa2   : > { %v258_v11 = vrot.slane %v257_v10, 1 }
  0xa4   : > { %v259_v13 = vadd.f32 %v258_v11, %v257_v10 }
  0xa6   : > { %v260_v14 = vadd.f32 %v259_v13, %v245_v12 }
  0xa8   : > { %262 = vst.msk [vmem:[#allocation2] sm:$0x1] %vm241_vm0, %v260_v14 }
  0xaf   : > { %v266_v16 = vld [vmem:[#allocation2] sm:$0x1] }
  0xb0   : > { %v269_v17 = vmul.f32 %v268_v15, %v266_v16 }
  0xb2   : > { %270 = vst.msk [vmem:[%s219_s11] sm:$0x1] %vm241_vm0, %v269_v17 }
  0xb3   : > { %454 = shalt.err (!%p451_p5)
}
  0xb4   : > { %s455_s29 = scalar_lea.hbm %s283_s20, 16  ;;  %s459_s5 = scalar_lea.hbm %s653_s3, 32 }
  0xb5   : > { %p456_p6 = scmp.ne.s32.totalorder %s283_s20, %s455_s29  ;;  %p460_p10 = scmp.lt.s32.totalorder %s283_s20, %s653_s3 }
  0xb6   : > { %p461_p11 = scmp.lt.s32.totalorder %s459_s5, %s455_s29 }
  0xb7   : > { %p457_p7 = pnand %p456_p6, %p585_p4 }
  0xb8   : > { %p462_p12 = por %p461_p11, %p460_p10 }
  0xb9   : > { %p458_p9 = pneg %p457_p7 }
  0xbb   : > { %p463_p13 = pnand %p462_p12, %p458_p9 }
  0xbd   : > { %466 = shalt.err (!%p463_p13)
}
  0xbe   : > { %383 = dma.vmem_to_hbm [thread:$0]  (%p585_p4), %s286_s12, 16, %s283_s20, %s272_s22  }
  0xbf PF: > { %p389_p0 = scmp.ge.s32.totalorder %s517_s19, 2  ;;  %s297_s8 = sand.u32 1, %s497_s14  }
  0xc0   : > { %s298_s9 = scalar_lea.sflag [#allocation5], %s297_s8 }
  0xc1   : > { %p386_p1 = pnand %p389_p0, %p592_p8 }
  0xc3   : > { %p387_p2 = pneg %p386_p1 }
  0xc5   : > { %492 = dma.done.wait (%p387_p2), %s298_s9, 16  }
  0xc6   : > { %494 = vsyncadd (%p387_p2), %s298_s9, 4294967280  ;;  %s17_s19 = sadd.s32 1, %s517_s19   ;;  %s656_s14 = smov %s501_s15 }
  0xc7   : > { %p14_p3 = scmp.ge.s32.totalorder %s17_s19, 4   ;;  %s657_s15 = smov %s505_s16 }
  0xc8   : > { %s658_s16 = smov %s598_s26  ;;  %s659_s17 = smov %s513_s18 }
  0xc9   : > { %s660_s18 = smov %s662_s21  ;;  %16 = sbr.rel (!%p14_p3) target bundleno = 6 (0x6), region = 78 }
  0xce   :  { %302 = vsyncpa [#allocation5], 1 }
  0xcf   :  { %304 = vsyncpa [#allocation5 + $0x1], 1 }

</bundles_post_ra>
